<compile_context>
chip_gen: v6e
topology: v6e:2x2x1
jax: 0.10.0
libtpu: 0.0.40
codegen_flags: <defaults>
</compile_context>

<pallas_src>
import functools

import jax
import jax.numpy as jnp
from jax.experimental import pallas as pl
from jax.experimental.pallas import tpu as pltpu

B_PAD = 8      # one full f32 sublane tile
C_PAD = 128    # one full lane tile (lane-dense output)


def rnn_kernel(x_ref, pa_ref, pb_ref, out_ref, *, seq_len, input_dim, hidden):
    """Whole forward pass in a single invocation (no grid).

    x_ref   : (S*B_PAD, D)     batch-padded, flattened inputs
    pa_ref  : (D+H+8, H)       packed slab: W_ih^T | W_hh^T | (b_ih + b_hh)
    pb_ref  : (H+8, C_PAD)     packed slab: W_fc^T (lane-padded 0) | b_fc (lane-padded -1e30)
    out_ref : (B_PAD, C_PAD)   padded log-probs (single unmasked full-tile store)
    """
    wih = pa_ref[0:input_dim, :]                                   # (D, H)
    whh = pa_ref[input_dim:input_dim + hidden, :]                  # (H, H)
    b = pa_ref[input_dim + hidden:input_dim + hidden + 1, :]       # (1, H)

    # Hoisted input projection for ALL time steps: one MXU matmul, bias folded
    # once.  Kept as a register value; no VMEM scratch round-trip.
    xp = jnp.dot(x_ref[...], wih, preferred_element_type=jnp.float32) + b

    # Serial recurrence: only h @ W_hh^T + tanh on the critical path.  Static
    # Python loop -> fully static, sublane-aligned (multiple-of-8) slices.
    # TODO(synk): keep W_hh staged in the MXU across steps via
    # pltpu.matmul_push_rhs / matmul_acc_lhs / matmul_pop (MRB accumulate on
    # v7x); left to the compiler here for robustness.
    h = jnp.zeros((B_PAD, hidden), jnp.float32)
    for t in range(seq_len):
        xp_t = xp[t * B_PAD:(t + 1) * B_PAD, :]                    # (B_PAD, H)
        h = jnp.tanh(xp_t + jnp.dot(h, whh,
                                    preferred_element_type=jnp.float32))

    # FC + log-softmax on the final hidden state.  Padded lanes carry bias
    # -1e30 so they never win the max and exp() underflows to 0.
    wfc = pb_ref[0:hidden, :]                                      # (H, C_PAD)
    bfc = pb_ref[hidden:hidden + 1, :]                             # (1, C_PAD)
    logits = jnp.dot(h, wfc, preferred_element_type=jnp.float32) + bfc
    m = jnp.max(logits, axis=1, keepdims=True)
    z = logits - m
    lse = jnp.log(jnp.sum(jnp.exp(z), axis=1, keepdims=True))
    out_ref[...] = z - lse                                         # (8,128) unmasked vst


def prepare_params(w_ih, w_hh, b_ih, b_hh, w_fc, b_fc):
    """One-time layout plumbing (kept OUT of the per-call jitted forward)."""
    H, D = w_ih.shape
    C = w_fc.shape[0]

    # Slab A: rows [0,D)=W_ih^T, [D,D+H)=W_hh^T, row D+H = b_ih+b_hh.
    slab_a = jnp.zeros((D + H + 8, H), jnp.float32)
    slab_a = slab_a.at[0:D, :].set(w_ih.T)
    slab_a = slab_a.at[D:D + H, :].set(w_hh.T)
    slab_a = slab_a.at[D + H, :].set(b_ih + b_hh)

    # Slab B: rows [0,H)=W_fc^T lane-padded with 0, row H = b_fc lane-padded
    # with -1e30 (so padded classes vanish under log-softmax).
    slab_b = jnp.zeros((H + 8, C_PAD), jnp.float32)
    slab_b = slab_b.at[0:H, 0:C].set(w_fc.T)
    slab_b = slab_b.at[H, :].set(jnp.full((C_PAD,), -1e30, jnp.float32))
    slab_b = slab_b.at[H, 0:C].set(b_fc)
    return slab_a, slab_b


@functools.partial(jax.jit, static_argnames=("num_classes",))
def rnn_forward(inputs, slab_a, slab_b, *, num_classes=5):
    """inputs: (S, B, D) float32. Returns (B, num_classes) log-probabilities."""
    S, B, D = inputs.shape
    H = slab_a.shape[1]

    # Per-call plumbing: pad batch to a full sublane tile, flatten time rows.
    x_pad = jnp.zeros((S, B_PAD, D), jnp.float32).at[:, :B, :].set(inputs)
    x2d = x_pad.reshape(S * B_PAD, D)

    vmem = lambda: pl.BlockSpec(memory_space=pltpu.MemorySpace.VMEM)
    out_padded = pl.pallas_call(
        functools.partial(rnn_kernel, seq_len=S, input_dim=D, hidden=H),
        out_shape=jax.ShapeDtypeStruct((B_PAD, C_PAD), jnp.float32),
        in_specs=[vmem(), vmem(), vmem()],
        out_specs=vmem(),
    )(x2d, slab_a, slab_b)

    return out_padded[:B, :num_classes]


def reference_forward(inputs, w_ih, w_hh, b_ih, b_hh, w_fc, b_fc):
    """Pure-JAX reference mirroring the PyTorch module."""
    S, B, _ = inputs.shape
    H = w_ih.shape[0]
    h = jnp.zeros((B, H), jnp.float32)
    for t in range(S):
        h = jnp.tanh(inputs[t] @ w_ih.T + b_ih + h @ w_hh.T + b_hh)
    logits = h @ w_fc.T + b_fc
    return jax.nn.log_softmax(logits, axis=1)


if __name__ == "__main__":
    SEQ, BATCH, INPUT_DIM, HIDDEN_DIM, NUM_CLASSES = 8, 2, 16, 32, 5

    key = jax.random.PRNGKey(0)
    k_x, k1, k2, k3, k4, k5, k6 = jax.random.split(key, 7)

    # PyTorch-style uniform(-1/sqrt(H), 1/sqrt(H)) init, deterministic.
    bound = 1.0 / (HIDDEN_DIM ** 0.5)
    u = lambda k, shape: jax.random.uniform(
        k, shape, jnp.float32, minval=-bound, maxval=bound)

    w_ih = u(k1, (HIDDEN_DIM, INPUT_DIM))
    w_hh = u(k2, (HIDDEN_DIM, HIDDEN_DIM))
    b_ih = u(k3, (HIDDEN_DIM,))
    b_hh = u(k4, (HIDDEN_DIM,))
    w_fc = u(k5, (NUM_CLASSES, HIDDEN_DIM))
    b_fc = u(k6, (NUM_CLASSES,))

    inputs = jax.random.normal(k_x, (SEQ, BATCH, INPUT_DIM), jnp.float32)

    # One-time parameter preparation (outside the per-call jitted forward).
    slab_a, slab_b = prepare_params(w_ih, w_hh, b_ih, b_hh, w_fc, b_fc)
    slab_a, slab_b = jax.block_until_ready((slab_a, slab_b))

    out = rnn_forward(inputs, slab_a, slab_b, num_classes=NUM_CLASSES)
    out = jax.block_until_ready(out)

    ref = reference_forward(inputs, w_ih, w_hh, b_ih, b_hh, w_fc, b_fc)
    assert out.shape == (BATCH, NUM_CLASSES)
    assert jnp.allclose(out, ref, atol=1e-5, rtol=1e-5)

    print("KERNEL_OK")
</pallas_src>

<mosaic_0001>
module attributes {stable_mosaic.version = 11 : i64} {
  func.func @rnn_kernel(%arg0: memref<64x16xf32, #tpu.memory_space<vmem>>, %arg1: memref<56x32xf32, #tpu.memory_space<vmem>>, %arg2: memref<40x128xf32, #tpu.memory_space<vmem>>, %arg3: memref<8x128xf32, #tpu.memory_space<vmem>>) attributes {dimension_semantics = [], scalar_prefetch = 0 : i64, scratch_operands = 0 : i64, tpu.core_type = #tpu.core_type<tc>} {
    %c0 = arith.constant 0 : index
    %c0_0 = arith.constant 0 : index
    %0 = vector.load %arg1[%c0, %c0_0] : memref<56x32xf32, #tpu.memory_space<vmem>>, vector<16x32xf32>
    %c16 = arith.constant 16 : index
    %c0_1 = arith.constant 0 : index
    %1 = vector.load %arg1[%c16, %c0_1] : memref<56x32xf32, #tpu.memory_space<vmem>>, vector<32x32xf32>
    %c48 = arith.constant 48 : index
    %c0_2 = arith.constant 0 : index
    %2 = vector.load %arg1[%c48, %c0_2] : memref<56x32xf32, #tpu.memory_space<vmem>>, vector<1x32xf32>
    %c0_3 = arith.constant 0 : index
    %c0_4 = arith.constant 0 : index
    %3 = vector.load %arg0[%c0_3, %c0_4] : memref<64x16xf32, #tpu.memory_space<vmem>>, vector<64x16xf32>
    %cst = arith.constant dense<0.000000e+00> : vector<64x32xf32>
    %4 = tpu.matmul %3, %0, %cst {dimension_numbers = #tpu.dot_dimension_numbers<[1], [0], [0], [1], [0, 0, 1, 1], [], []>} : vector<64x16xf32>, vector<16x32xf32>, vector<64x32xf32> -> vector<64x32xf32>
    %5 = vector.broadcast %2 : vector<1x32xf32> to vector<64x32xf32>
    %6 = arith.addf %4, %5 : vector<64x32xf32>
    %cst_5 = arith.constant 0.000000e+00 : f32
    %7 = vector.broadcast %cst_5 : f32 to vector<8x32xf32>
    %8 = vector.extract_strided_slice %6 {offsets = [0, 0], sizes = [8, 32], strides = [1, 1]} : vector<64x32xf32> to vector<8x32xf32>
    %cst_6 = arith.constant dense<0.000000e+00> : vector<8x32xf32>
    %9 = tpu.matmul %7, %1, %cst_6 {dimension_numbers = #tpu.dot_dimension_numbers<[1], [0], [0], [1], [0, 0, 1, 1], [], []>} : vector<8x32xf32>, vector<32x32xf32>, vector<8x32xf32> -> vector<8x32xf32>
    %10 = arith.addf %8, %9 : vector<8x32xf32>
    %11 = math.tanh %10 : vector<8x32xf32>
    %12 = vector.extract_strided_slice %6 {offsets = [8, 0], sizes = [8, 32], strides = [1, 1]} : vector<64x32xf32> to vector<8x32xf32>
    %cst_7 = arith.constant dense<0.000000e+00> : vector<8x32xf32>
    %13 = tpu.matmul %11, %1, %cst_7 {dimension_numbers = #tpu.dot_dimension_numbers<[1], [0], [0], [1], [0, 0, 1, 1], [], []>} : vector<8x32xf32>, vector<32x32xf32>, vector<8x32xf32> -> vector<8x32xf32>
    %14 = arith.addf %12, %13 : vector<8x32xf32>
    %15 = math.tanh %14 : vector<8x32xf32>
    %16 = vector.extract_strided_slice %6 {offsets = [16, 0], sizes = [8, 32], strides = [1, 1]} : vector<64x32xf32> to vector<8x32xf32>
    %cst_8 = arith.constant dense<0.000000e+00> : vector<8x32xf32>
    %17 = tpu.matmul %15, %1, %cst_8 {dimension_numbers = #tpu.dot_dimension_numbers<[1], [0], [0], [1], [0, 0, 1, 1], [], []>} : vector<8x32xf32>, vector<32x32xf32>, vector<8x32xf32> -> vector<8x32xf32>
    %18 = arith.addf %16, %17 : vector<8x32xf32>
    %19 = math.tanh %18 : vector<8x32xf32>
    %20 = vector.extract_strided_slice %6 {offsets = [24, 0], sizes = [8, 32], strides = [1, 1]} : vector<64x32xf32> to vector<8x32xf32>
    %cst_9 = arith.constant dense<0.000000e+00> : vector<8x32xf32>
    %21 = tpu.matmul %19, %1, %cst_9 {dimension_numbers = #tpu.dot_dimension_numbers<[1], [0], [0], [1], [0, 0, 1, 1], [], []>} : vector<8x32xf32>, vector<32x32xf32>, vector<8x32xf32> -> vector<8x32xf32>
    %22 = arith.addf %20, %21 : vector<8x32xf32>
    %23 = math.tanh %22 : vector<8x32xf32>
    %24 = vector.extract_strided_slice %6 {offsets = [32, 0], sizes = [8, 32], strides = [1, 1]} : vector<64x32xf32> to vector<8x32xf32>
    %cst_10 = arith.constant dense<0.000000e+00> : vector<8x32xf32>
    %25 = tpu.matmul %23, %1, %cst_10 {dimension_numbers = #tpu.dot_dimension_numbers<[1], [0], [0], [1], [0, 0, 1, 1], [], []>} : vector<8x32xf32>, vector<32x32xf32>, vector<8x32xf32> -> vector<8x32xf32>
    %26 = arith.addf %24, %25 : vector<8x32xf32>
    %27 = math.tanh %26 : vector<8x32xf32>
    %28 = vector.extract_strided_slice %6 {offsets = [40, 0], sizes = [8, 32], strides = [1, 1]} : vector<64x32xf32> to vector<8x32xf32>
    %cst_11 = arith.constant dense<0.000000e+00> : vector<8x32xf32>
    %29 = tpu.matmul %27, %1, %cst_11 {dimension_numbers = #tpu.dot_dimension_numbers<[1], [0], [0], [1], [0, 0, 1, 1], [], []>} : vector<8x32xf32>, vector<32x32xf32>, vector<8x32xf32> -> vector<8x32xf32>
    %30 = arith.addf %28, %29 : vector<8x32xf32>
    %31 = math.tanh %30 : vector<8x32xf32>
    %32 = vector.extract_strided_slice %6 {offsets = [48, 0], sizes = [8, 32], strides = [1, 1]} : vector<64x32xf32> to vector<8x32xf32>
    %cst_12 = arith.constant dense<0.000000e+00> : vector<8x32xf32>
    %33 = tpu.matmul %31, %1, %cst_12 {dimension_numbers = #tpu.dot_dimension_numbers<[1], [0], [0], [1], [0, 0, 1, 1], [], []>} : vector<8x32xf32>, vector<32x32xf32>, vector<8x32xf32> -> vector<8x32xf32>
    %34 = arith.addf %32, %33 : vector<8x32xf32>
    %35 = math.tanh %34 : vector<8x32xf32>
    %36 = vector.extract_strided_slice %6 {offsets = [56, 0], sizes = [8, 32], strides = [1, 1]} : vector<64x32xf32> to vector<8x32xf32>
    %cst_13 = arith.constant dense<0.000000e+00> : vector<8x32xf32>
    %37 = tpu.matmul %35, %1, %cst_13 {dimension_numbers = #tpu.dot_dimension_numbers<[1], [0], [0], [1], [0, 0, 1, 1], [], []>} : vector<8x32xf32>, vector<32x32xf32>, vector<8x32xf32> -> vector<8x32xf32>
    %38 = arith.addf %36, %37 : vector<8x32xf32>
    %39 = math.tanh %38 : vector<8x32xf32>
    %c0_14 = arith.constant 0 : index
    %c0_15 = arith.constant 0 : index
    %40 = vector.load %arg2[%c0_14, %c0_15] : memref<40x128xf32, #tpu.memory_space<vmem>>, vector<32x128xf32>
    %c32 = arith.constant 32 : index
    %c0_16 = arith.constant 0 : index
    %41 = vector.load %arg2[%c32, %c0_16] : memref<40x128xf32, #tpu.memory_space<vmem>>, vector<1x128xf32>
    %cst_17 = arith.constant dense<0.000000e+00> : vector<8x128xf32>
    %42 = tpu.matmul %39, %40, %cst_17 {dimension_numbers = #tpu.dot_dimension_numbers<[1], [0], [0], [1], [0, 0, 1, 1], [], []>} : vector<8x32xf32>, vector<32x128xf32>, vector<8x128xf32> -> vector<8x128xf32>
    %43 = vector.broadcast %41 : vector<1x128xf32> to vector<8x128xf32>
    %44 = arith.addf %42, %43 : vector<8x128xf32>
    %cst_18 = arith.constant dense<0xFF800000> : vector<8xf32>
    %45 = vector.multi_reduction <maximumf>, %44, %cst_18 [1] : vector<8x128xf32> to vector<8xf32>
    %46 = vector.shape_cast %45 : vector<8xf32> to vector<8x1xf32>
    %47 = vector.broadcast %46 : vector<8x1xf32> to vector<8x128xf32>
    %48 = arith.subf %44, %47 : vector<8x128xf32>
    %49 = math.exp %48 : vector<8x128xf32>
    %cst_19 = arith.constant dense<0.000000e+00> : vector<8xf32>
    %50 = vector.multi_reduction <add>, %49, %cst_19 [1] : vector<8x128xf32> to vector<8xf32>
    %51 = vector.shape_cast %50 : vector<8xf32> to vector<8x1xf32>
    %52 = math.log %51 : vector<8x1xf32>
    %53 = vector.broadcast %52 : vector<8x1xf32> to vector<8x128xf32>
    %54 = arith.subf %48, %53 : vector<8x128xf32>
    %c0_20 = arith.constant 0 : index
    %c0_21 = arith.constant 0 : index
    %55 = vector.load %arg3[%c0_20, %c0_21] : memref<8x128xf32, #tpu.memory_space<vmem>>, vector<8x128xf32>
    tpu.vector_store %arg3[%c0_20, %c0_21], %54 {strides = array<i32>} : memref<8x128xf32, #tpu.memory_space<vmem>>, vector<8x128xf32>,
    return
  }
}

</mosaic_0001>

<bundles_post_ra>
// kernel: rnn_forward.1
= control target key start
LH: loop header
LB: loop body
LE: loop exit
PB: predicated region body
PF: predicated region fallthrough
CT: control target
= control target key end

     0   :  { %v1071_v0 = vmov 0.0   ;;  %vm1072_vm0 = vmmov 0   ;;  %vm33_vm1 = vcmask 130048   ;;  %vm163_vm2 = vcmask 261120   ;;  %s1280_s1 = inlined_call_operand.vmem [shape: f32[56,32], index: 1, kind: input, shape index: {}]   ;;  %s1281_s0 = inlined_call_operand.vmem [shape: f32[64,16], index: 0, kind: input, shape index: {}]   ;;  %s1282_s2 = inlined_call_operand.vmem [shape: f32[40,128], index: 2, kind: input, shape index: {}]   ;;  %s1283_s3 = inlined_call_operand.vmem [shape: f32[8,128], index: 3, kind: output, shape index: {}]  }
   0x1   :  { %950 = vmatprep.subr.mxu1 %v1071_v0  ;;  %v15_v1 = vld [vmem:[%s1280_s1 + $0x8] sm:$0xff]  ;;  %v14_v3 = vld [vmem:[%s1280_s1] sm:$0xff]  ;;  %958 = vmatprep.mubr.msk.f32.mxu1 %vm1072_vm0, %v1071_v0  ;;  %v1124_v7 = vld [vmem:[%s1280_s1 + $0x18] sm:$0xff] }
   0x2   :  { %v1100_v2 = vld [vmem:[%s1280_s1 + $0x28] sm:$0xff]  ;;  %934 = vmatprep.subr.mxu0 %v15_v1  ;;  %v1111_v4 = vld [vmem:[%s1280_s1 + $0x20] sm:$0xff]  ;;  %v1132_v8 = vld [vmem:[%s1280_s1 + $0x10] sm:$0xff] }
   0x3   :  { %951 = vmatpush3.msra.mxu1 %v1100_v2  ;;  %v21_v5 = vld [vmem:[%s1281_s0] sm:$0xff]  ;;  %935 = vmatpush3.msra.mxu0 %v15_v1  ;;  %v22_v6 = vld [vmem:[%s1281_s0 + $0x8] sm:$0xff]  ;;  %v1161_v10 = vld [vmem:[%s1280_s1 + $0x30] ss:$0 sm:$0xff] }
   0x4   :  { %952 = vmatprep.subr.mxu1 %v1071_v0  ;;  %936 = vmatprep.subr.mxu0 %v14_v3  ;;  %v23_v17 = vld [vmem:[%s1281_s0 + $0x10] sm:$0xff]  ;;  %v24_v18 = vld [vmem:[%s1281_s0 + $0x18] sm:$0xff]  ;;  %v25_v19 = vld [vmem:[%s1281_s0 + $0x20] sm:$0xff] }
   0x5   :  { %953 = vmatpush3.msra.mxu1 %v1111_v4  ;;  %937 = vmatpush3.msra.mxu0 %v14_v3  ;;  %v26_v20 = vld [vmem:[%s1281_s0 + $0x28] sm:$0xff]  ;;  %v27_v21 = vld [vmem:[%s1281_s0 + $0x30] sm:$0xff]  ;;  %v28_v22 = vld [vmem:[%s1281_s0 + $0x38] sm:$0xff] }
   0x6   :  { %938 = vmatprep.mubr.msk.f32.mxu0 %vm33_vm1, %v21_v5  ;;  %954 = vmatprep.subr.mxu1 %v1071_v0  ;;  %v767_v59 = vld [vmem:[%s1282_s2 + $0x18] sm:$0xff]  ;;  %v766_v60 = vld [vmem:[%s1282_s2 + $0x10] sm:$0xff]  ;;  %v765_v61 = vld [vmem:[%s1282_s2 + $0x8] sm:$0xff] }
   0x7   :  { %939 = vmatmul.mubr.msk.f32.vlgmr.msra.gmra.mxu0 %vm33_vm1, %v22_v6  ;;  %955 = vmatpush3.msra.mxu1 %v1124_v7  ;;  %v764_v62 = vld [vmem:[%s1282_s2] sm:$0xff] }
   0x8   :  { %972 = vmatprep.subr.mxu0 %v1071_v0  ;;  %956 = vmatprep.subr.mxu1 %v1071_v0  ;;  %v877_v5 = vld [vmem:[%s1282_s2 + $0x20] ss:$0 sm:$0xff] }
   0x9   :  { %973 = vmatpush3.msra.mxu0 %v1100_v2  ;;  %957 = vmatpush3.msra.mxu1 %v1132_v8 }
   0xa   :  { %974 = vmatprep.subr.mxu0 %v1071_v0  ;;  %959 = vmatmul.mubr.f32.vlgmr.msra.gmra.mxu1 %v1071_v0 }
   0xb   :  { %961 = vmatprep.subr.mxu1 %v1071_v0  ;;  %969 = vmatprep.mubr.msk.f32.mxu1 %vm1072_vm0, %v1071_v0 }
   0xc   :  { %962 = vmatpush3.msra.mxu1 %v1100_v2  ;;  %975 = vmatpush3.msra.mxu0 %v1111_v4 }
   0xd   :  { %963 = vmatprep.subr.mxu1 %v1071_v0  ;;  %976 = vmatprep.subr.mxu0 %v1071_v0 }
   0xe   :  { %964 = vmatpush3.msra.mxu1 %v1111_v4  ;;  %977 = vmatpush3.msra.mxu0 %v1124_v7 }
   0xf   :  { %965 = vmatprep.subr.mxu1 %v1071_v0  ;;  %978 = vmatprep.subr.mxu0 %v1071_v0 }
  0x10   :  { %966 = vmatpush3.msra.mxu1 %v1124_v7  ;;  %979 = vmatpush3.msra.mxu0 %v1132_v8 }
  0x11   :  { %967 = vmatprep.subr.mxu1 %v1071_v0  ;;  %994 = vmatprep.subr.mxu0 %v1071_v0 }
  0x12   :  { %968 = vmatpush3.msra.mxu1 %v1132_v8  ;;  %941 = vmatprep.mubr.msk.f32.mxu0 %vm33_vm1, %v23_v17 }
  0x13   :  { %983 = vmatprep.subr.mxu1 %v1071_v0  ;;  %942 = vmatmul.mubr.msk.f32.gmra.mxu0 %vm33_vm1, %v24_v18 }
  0x14   :  { %944 = vmatprep.mubr.msk.f32.mxu0 %vm33_vm1, %v25_v19 }
  0x17   :  { %945 = vmatmul.mubr.msk.f32.gmra.mxu0 %vm33_vm1, %v26_v20 }
  0x18   :  { %947 = vmatprep.mubr.msk.f32.mxu0 %vm33_vm1, %v27_v21 }
  0x1b   :  { %948 = vmatmul.mubr.msk.f32.gmra.mxu0 %vm33_vm1, %v28_v22 }
  0x1c   :  { %980 = vmatprep.mubr.msk.f32.mxu0 %vm1072_vm0, %v1071_v0 }
  0xc7   :  { %v940_v9 = vpop.f32.mrf.mxu0 }
  0xc8   :  { %v130_v23 = vadd.f32 %v940_v9, %v1161_v10 }
  0xc9   :  { %v124_v11 = vpop.f32.mrf.mxu0 }
  0xca   :  { %v125_v12 = vadd.f32 %v1161_v10, %v124_v11  ;;  %v233_v13 = vpop.f32.mrf.mxu1 }
  0xcc   :  { %v237_v14 = vadd.f32 %v233_v13, %v125_v12  ;;  %v960_v15 = vpop.f32.mrf.mxu1 }
  0xce   :  { %1051 = vtanh.f32 %v237_v14 }
  0xd3   :  { %v943_v28 = vpop.f32.mrf.mxu0 }
  0xd4   :  { %v140_v39 = vadd.f32 %v943_v28, %v1161_v10 }
  0xd5   :  { %v134_v29 = vpop.f32.mrf.mxu0 }
  0xd6   :  { %v135_v34 = vadd.f32 %v1161_v10, %v134_v29 }
  0xd7   :  { %v946_v30 = vpop.f32.mrf.mxu0 }
  0xd8   :  { %v150_v49 = vadd.f32 %v946_v30, %v1161_v10 }
  0xd9   :  { %v144_v31 = vpop.f32.mrf.mxu0 }
  0xda   :  { %v145_v44 = vadd.f32 %v1161_v10, %v144_v31 }
  0xdb   :  { %v1052_v16 = vpop.eup %1051  ;;  %v1213_v32 = vpop.f32.mrf.mxu0 }
  0xdc   :  { %970 = vmatmul.mubr.msk.f32.vlgmr.msra.gmra.mxu1 %vm163_vm2, %v1052_v16  ;;  %v160_v63 = vadd.f32 %v1213_v32, %v1161_v10 }
  0xdd   :  { %984 = vmatpush3.msra.mxu1 %v1100_v2  ;;  %991 = vmatprep.mubr.msk.f32.mxu1 %vm1072_vm0, %v1071_v0  ;;  %v154_v33 = vpop.f32.mrf.mxu0 }
  0xde   :  { %985 = vmatprep.subr.mxu1 %v1071_v0  ;;  %v155_v54 = vadd.f32 %v1161_v10, %v154_v33 }
  0xdf   :  { %986 = vmatpush3.msra.mxu1 %v1111_v4 }
  0xe0   :  { %987 = vmatprep.subr.mxu1 %v1071_v0 }
  0xe1   :  { %988 = vmatpush3.msra.mxu1 %v1124_v7 }
  0xe2   :  { %989 = vmatprep.subr.mxu1 %v1071_v0 }
  0xe3   :  { %990 = vmatpush3.msra.mxu1 %v1132_v8 }
  0xe4   :  { %1005 = vmatprep.subr.mxu1 %v1071_v0 }
 0x19c   :  { %v308_v24 = vpop.f32.mrf.mxu1 }
 0x19d   :  { %v312_v25 = vadd.f32 %v308_v24, %v130_v23 }
 0x19e   :  { %v971_v26 = vpop.f32.mrf.mxu1 }
 0x19f   :  { %1053 = vtanh.f32 %v312_v25 }
 0x1ac   :  { %v1054_v27 = vpop.eup %1053 }
 0x1ad   :  { %981 = vmatmul.mubr.msk.f32.vlgmr.msra.gmra.mxu0 %vm163_vm2, %v1054_v27 }
 0x1ae   :  { %995 = vmatpush3.msra.mxu0 %v1100_v2  ;;  %1002 = vmatprep.mubr.msk.f32.mxu0 %vm1072_vm0, %v1071_v0 }
 0x1af   :  { %996 = vmatprep.subr.mxu0 %v1071_v0 }
 0x1b0   :  { %997 = vmatpush3.msra.mxu0 %v1111_v4 }
 0x1b1   :  { %998 = vmatprep.subr.mxu0 %v1071_v0 }
 0x1b2   :  { %999 = vmatpush3.msra.mxu0 %v1124_v7 }
 0x1b3   :  { %1000 = vmatprep.subr.mxu0 %v1071_v0 }
 0x1b4   :  { %1001 = vmatpush3.msra.mxu0 %v1132_v8 }
 0x1b5   :  { %1016 = vmatprep.subr.mxu0 %v1071_v0 }
 0x26d   :  { %v383_v35 = vpop.f32.mrf.mxu0 }
 0x26e   :  { %v387_v36 = vadd.f32 %v383_v35, %v135_v34 }
 0x26f   :  { %v982_v37 = vpop.f32.mrf.mxu0 }
 0x270   :  { %1055 = vtanh.f32 %v387_v36 }
 0x27d   :  { %v1056_v38 = vpop.eup %1055 }
 0x27e   :  { %992 = vmatmul.mubr.msk.f32.vlgmr.msra.gmra.mxu1 %vm163_vm2, %v1056_v38 }
 0x27f   :  { %1006 = vmatpush3.msra.mxu1 %v1100_v2  ;;  %1013 = vmatprep.mubr.msk.f32.mxu1 %vm1072_vm0, %v1071_v0 }
 0x280   :  { %1007 = vmatprep.subr.mxu1 %v1071_v0 }
 0x281   :  { %1008 = vmatpush3.msra.mxu1 %v1111_v4 }
 0x282   :  { %1009 = vmatprep.subr.mxu1 %v1071_v0 }
 0x283   :  { %1010 = vmatpush3.msra.mxu1 %v1124_v7 }
 0x284   :  { %1011 = vmatprep.subr.mxu1 %v1071_v0 }
 0x285   :  { %1012 = vmatpush3.msra.mxu1 %v1132_v8 }
 0x286   :  { %1027 = vmatprep.subr.mxu1 %v1071_v0 }
 0x33e   :  { %v458_v40 = vpop.f32.mrf.mxu1 }
 0x33f   :  { %v462_v41 = vadd.f32 %v458_v40, %v140_v39 }
 0x340   :  { %v993_v42 = vpop.f32.mrf.mxu1 }
 0x341   :  { %1057 = vtanh.f32 %v462_v41 }
 0x34e   :  { %v1058_v43 = vpop.eup %1057 }
 0x34f   :  { %1003 = vmatmul.mubr.msk.f32.vlgmr.msra.gmra.mxu0 %vm163_vm2, %v1058_v43 }
 0x350   :  { %1017 = vmatpush3.msra.mxu0 %v1100_v2  ;;  %1024 = vmatprep.mubr.msk.f32.mxu0 %vm1072_vm0, %v1071_v0 }
 0x351   :  { %1018 = vmatprep.subr.mxu0 %v1071_v0 }
 0x352   :  { %1019 = vmatpush3.msra.mxu0 %v1111_v4 }
 0x353   :  { %1020 = vmatprep.subr.mxu0 %v1071_v0 }
 0x354   :  { %1021 = vmatpush3.msra.mxu0 %v1124_v7 }
 0x355   :  { %1022 = vmatprep.subr.mxu0 %v1071_v0 }
 0x356   :  { %1023 = vmatpush3.msra.mxu0 %v1132_v8 }
 0x357   :  { %1038 = vmatprep.subr.mxu0 %v1071_v0 }
 0x40f   :  { %v533_v45 = vpop.f32.mrf.mxu0 }
 0x410   :  { %v537_v46 = vadd.f32 %v533_v45, %v145_v44 }
 0x411   :  { %v1004_v47 = vpop.f32.mrf.mxu0 }
 0x412   :  { %1059 = vtanh.f32 %v537_v46 }
 0x41f   :  { %v1060_v48 = vpop.eup %1059 }
 0x420   :  { %1014 = vmatmul.mubr.msk.f32.vlgmr.msra.gmra.mxu1 %vm163_vm2, %v1060_v48 }
 0x421   :  { %1028 = vmatpush3.msra.mxu1 %v1100_v2  ;;  %1035 = vmatprep.mubr.msk.f32.mxu1 %vm1072_vm0, %v1071_v0 }
 0x422   :  { %1029 = vmatprep.subr.mxu1 %v1071_v0 }
 0x423   :  { %1030 = vmatpush3.msra.mxu1 %v1111_v4 }
 0x424   :  { %1031 = vmatprep.subr.mxu1 %v1071_v0 }
 0x425   :  { %1032 = vmatpush3.msra.mxu1 %v1124_v7 }
 0x426   :  { %1033 = vmatprep.subr.mxu1 %v1071_v0 }
 0x427   :  { %1034 = vmatpush3.msra.mxu1 %v1132_v8 }
 0x4e0   :  { %v608_v50 = vpop.f32.mrf.mxu1 }
 0x4e1   :  { %v612_v51 = vadd.f32 %v608_v50, %v150_v49 }
 0x4e2   :  { %v1015_v52 = vpop.f32.mrf.mxu1 }
 0x4e3   :  { %1061 = vtanh.f32 %v612_v51 }
 0x4f0   :  { %v1062_v53 = vpop.eup %1061 }
 0x4f1   :  { %1025 = vmatmul.mubr.msk.f32.vlgmr.msra.gmra.mxu0 %vm163_vm2, %v1062_v53 }
 0x4f2   :  { %1046 = vmatprep.mubr.msk.f32.mxu0 %vm1072_vm0, %v1071_v0  ;;  %1039 = vmatpush3.msra.mxu0 %v767_v59 }
 0x4f3   :  { %1040 = vmatprep.subr.mxu0 %v1071_v0 }
 0x4f4   :  { %1041 = vmatpush3.msra.mxu0 %v766_v60 }
 0x4f5   :  { %1042 = vmatprep.subr.mxu0 %v1071_v0 }
 0x4f6   :  { %1043 = vmatpush3.msra.mxu0 %v765_v61 }
 0x4f7   :  { %1044 = vmatprep.subr.mxu0 %v1071_v0 }
 0x4f8   :  { %1045 = vmatpush3.msra.mxu0 %v764_v62 }
 0x5b1   :  { %v683_v55 = vpop.f32.mrf.mxu0 }
 0x5b2   :  { %v687_v56 = vadd.f32 %v683_v55, %v155_v54 }
 0x5b3   :  { %v1026_v57 = vpop.f32.mrf.mxu0 }
 0x5b4   :  { %1063 = vtanh.f32 %v687_v56 }
 0x5c1   :  { %v1064_v58 = vpop.eup %1063 }
 0x5c2   :  { %1036 = vmatmul.mubr.msk.f32.vlgmr.msra.gmra.mxu1 %vm163_vm2, %v1064_v58 }
 0x682   :  { %v758_v1 = vpop.f32.mrf.mxu1 }
 0x683   :  { %v762_v2 = vadd.f32 %v758_v1, %v160_v63 }
 0x684   :  { %v1037_v3 = vpop.f32.mrf.mxu1 }
 0x685   :  { %1065 = vtanh.f32 %v762_v2 }
 0x692   :  { %v1066_v4 = vpop.eup %1065 }
 0x693   :  { %1047 = vmatmul.mubr.msk.f32.vlgmr.msra.gmra.mxu0 %vm163_vm2, %v1066_v4 }
 0x753   :  { %v842_v6 = vpop.f32.mrf.mxu0 }
 0x754   :  { %v843_v7 = vadd.f32 %v877_v5, %v842_v6 }
 0x755   :  { %v1048_v8 = vpop.f32.mrf.mxu0 }
 0x756   :  { %846 = vmax.xlane.f32.xlu0 %v843_v7 }
 0x7df   :  { %v847_v0 = vpop.xlane.xlu0 %846 }
 0x7e0   :  { %v848_v9 = vsub.f32 %v843_v7, %v847_v0 }
 0x7e2   :  { %v849_v11 = vmul.f32 1.442695, %v848_v9 }
 0x7e4   :  { %1067 = vpow2.f32 %v849_v11 }
 0x7f1   :  { %v1068_v10 = vpop.eup %1067 }
 0x7f2   :  { %851 = vadd.xlane.f32.xlu0 %v1068_v10 }
 0x87b   :  { %v852_v12 = vpop.xlane.xlu0 %851 }
 0x87c   :  { %1069 = vlog2.f32 %v852_v12 }
 0x889   :  { %v1070_v13 = vpop.eup %1069 }
 0x88a   :  { %v854_v14 = vmul.f32 0.6931472, %v1070_v13 }
 0x88c   :  { %v855_v15 = vsub.f32 %v848_v9, %v854_v14 }
 0x88e   :  { %856 = vst [vmem:[%s1283_s3] sm:$0xff] %v855_v15 }

</bundles_post_ra>
